<compile_context>
chip_gen: v5e
topology: v5e:2x2
jax: 0.10.0
libtpu: 0.0.40
codegen_flags: <defaults>
</compile_context>

<pallas_src>
import functools

import jax
import jax.numpy as jnp
from jax.experimental import pallas as pl
from jax.experimental.pallas import tpu as pltpu


_MIN_SPLIT_BYTES = 1 << 20        # split grid into >= ~4 steps above 1 MiB
_DEFAULT_BLOCK_BYTES = 6 << 20    # ~6 MiB per block (v6e/v7x sweet spot)
_VMEM_LIMIT_BYTES = 40 << 20      # 2 arrays x 2 buffers x 6 MiB = 24 MiB + headroom;
                                  # stays under v7x's 64 MiB physical VMEM per TC.


# ----------------------------------------------------------------------------
# The function wrapped by Lambda (deterministic, elementwise).
# Equivalent PyTorch: Lambda(lambda x: F.gelu(x, approximate="tanh"))
# ----------------------------------------------------------------------------
def _gelu_tanh(x):
    # Upcast sub-f32 floats: v5e VPU/EUP have no native bf16, and f32 math
    # avoids packed-lane shuffle overhead.  Cast back to the input dtype.
    # (Note: for integer inputs jnp.tanh promotes to float and the final
    # astype truncates — fine for GELU, document for arbitrary user fns.)
    if jnp.issubdtype(x.dtype, jnp.floating) and jnp.dtype(x.dtype).itemsize < 4:
        compute_dtype = jnp.float32
    else:
        compute_dtype = x.dtype
    xf = x.astype(compute_dtype)
    c = jnp.asarray(0.7978845608028654, compute_dtype)   # sqrt(2/pi)
    a = jnp.asarray(0.044715, compute_dtype)
    y = 0.5 * xf * (1.0 + jnp.tanh(c * (xf + a * xf * xf * xf)))
    return y.astype(x.dtype)


# ----------------------------------------------------------------------------
# Pallas kernel: apply the wrapped fn elementwise to a VMEM tile.
# ----------------------------------------------------------------------------
def _lambda_kernel(fn, x_ref, o_ref):
    o_ref[...] = fn(x_ref[...]).astype(o_ref.dtype)


def make_lambda_pallas(fn, *, target_block_bytes=_DEFAULT_BLOCK_BYTES,
                       alias_input=False):
    """Return a callable reproducing Lambda(fn).forward for elementwise fn.

    alias_input=True adds input_output_aliases={0: 0} (in-place update,
    halves peak HBM footprint).  Only a net win if the caller donates the
    input at its jit boundary — otherwise XLA inserts a defensive copy —
    so it is opt-in.
    """

    def apply(x):
        orig_shape = x.shape
        dtype = x.dtype
        total = int(x.size)
        itemsize = jnp.dtype(dtype).itemsize
        sublane = max(8, 32 // itemsize)   # 8 for f32, 16 for bf16, 32 for int8

        flat = jnp.ravel(x)                # contiguous -> metadata-only reshape
        rem = total % 128
        aligned = total - rem

        if aligned == 0:
            # Fewer than 128 elements: no lane-dense slab possible; plain jnp
            # is both correct and cheaper than any kernel launch.
            return fn(x)

        # Widest lane-dense width (multiple of 128) dividing the aligned count.
        lanes = 128
        for cand in (2048, 1024, 512, 256, 128):
            if aligned % cand == 0:
                lanes = cand
                break
        n_rows = aligned // lanes
        slab_bytes = aligned * itemsize

        # Row tile: <= target_block_bytes, dtype-aware sublane multiple.
        max_rows = max(
            sublane,
            (target_block_bytes // (lanes * itemsize)) // sublane * sublane,
        )
        if slab_bytes <= _MIN_SPLIT_BYTES:
            # Tiny slab: single grid step (per-step overhead would dominate
            # any pipelining / megacore win at this size).
            row_tile = n_rows
        else:
            # Aim for >= ~4 grid steps so both v7x TensorCores get work and
            # DMA/compute pipelining engages; cap at the VMEM-budgeted block.
            rows_quarter = pl.cdiv(pl.cdiv(n_rows, 4), sublane) * sublane
            row_tile = max(sublane, min(max_rows, rows_quarter))
        grid = (pl.cdiv(n_rows, row_tile),)   # ragged last block -> Pallas masking

        head = flat[:aligned] if rem else flat
        x2d = head.reshape(n_rows, lanes)

        kernel = functools.partial(_lambda_kernel, fn)
        call_kwargs = {}
        if alias_input:
            call_kwargs["input_output_aliases"] = {0: 0}

        out2d = pl.pallas_call(
            kernel,
            out_shape=jax.ShapeDtypeStruct((n_rows, lanes), dtype),
            grid_spec=pltpu.PrefetchScalarGridSpec(
                num_scalar_prefetch=0,
                grid=grid,
                in_specs=[pl.BlockSpec((row_tile, lanes), lambda i: (i, 0))],
                out_specs=pl.BlockSpec((row_tile, lanes), lambda i: (i, 0)),
            ),
            compiler_params=pltpu.CompilerParams(
                dimension_semantics=("parallel",),    # v7x: shard steps over 2 TCs
                vmem_limit_bytes=_VMEM_LIMIT_BYTES,   # 4 x 6 MiB buffers fit easily
            ),
            cost_estimate=pl.CostEstimate(
                flops=10 * aligned,
                transcendentals=aligned,
                bytes_accessed=2 * slab_bytes,
            ),
            **call_kwargs,
        )(x2d)

        out_flat = out2d.reshape(-1)
        if rem:
            # Ragged tail (< 128 elements): plain jnp + stitch.  Replaces the
            # old whole-array concatenate-with-zeros pad, which copied the
            # entire input through HBM before the kernel.
            out_flat = jnp.concatenate([out_flat, fn(flat[aligned:])])
        return out_flat.reshape(orig_shape)

    return apply


# The concrete Lambda instance implemented here.
lambda_gelu = make_lambda_pallas(_gelu_tanh)


if __name__ == "__main__":
    # Small NCHW input, consistent with conv-style usage in bigmem.
    x = jax.random.normal(jax.random.PRNGKey(0), (2, 4, 16, 16), dtype=jnp.float32)
    y = lambda_gelu(x)
    jax.block_until_ready(y)
    y_ref = _gelu_tanh(x)
    assert y.shape == x.shape and y.dtype == x.dtype
    assert jnp.max(jnp.abs(y - y_ref)) < 1e-5

    # Ragged element count (462, not a multiple of 128): aligned-prefix kernel
    # plus plain-jnp tail stitch.
    x2 = jax.random.normal(jax.random.PRNGKey(1), (2, 3, 7, 11), dtype=jnp.float32)
    y2 = lambda_gelu(x2)
    jax.block_until_ready(y2)
    assert jnp.max(jnp.abs(y2 - _gelu_tanh(x2))) < 1e-5

    # bf16 input (upcast to f32 inside the kernel, cast back on store).
    x3 = jax.random.normal(jax.random.PRNGKey(2), (2, 8, 16, 16), dtype=jnp.bfloat16)
    y3 = lambda_gelu(x3)
    jax.block_until_ready(y3)
    assert y3.dtype == jnp.bfloat16
    assert jnp.max(jnp.abs(y3.astype(jnp.float32)
                           - _gelu_tanh(x3).astype(jnp.float32))) < 2e-2

    # >1 MiB slab: exercises the multi-step grid (pipelining + v7x megacore).
    x4 = jax.random.normal(jax.random.PRNGKey(3), (8, 16, 64, 64), dtype=jnp.float32)
    y4 = lambda_gelu(x4)
    jax.block_until_ready(y4)
    assert jnp.max(jnp.abs(y4 - _gelu_tanh(x4))) < 1e-5

    print("KERNEL_OK")
</pallas_src>

<mosaic_0001>
module attributes {stable_mosaic.version = 11 : i64} {
  func.func @_lambda_kernel(%arg0: i32, %arg1: memref<1x2048xf32, #tpu.memory_space<vmem>>, %arg2: memref<1x2048xf32, #tpu.memory_space<vmem>>) attributes {dimension_semantics = [#tpu.dimension_semantics<parallel>], iteration_bounds = array<i64: 1>, scalar_prefetch = 0 : i64, scratch_operands = 0 : i64, tpu.core_type = #tpu.core_type<tc>, window_params = [{transform_indices = @transform_0, window_bounds = array<i64: 1, 2048>}, {transform_indices = @transform_1, window_bounds = array<i64: 1, 2048>}]} {
    %c0 = arith.constant 0 : index
    %c0_0 = arith.constant 0 : index
    %0 = vector.load %arg1[%c0, %c0_0] : memref<1x2048xf32, #tpu.memory_space<vmem>>, vector<1x2048xf32>
    %cst = arith.constant 5.000000e-01 : f32
    %1 = vector.broadcast %cst : f32 to vector<1x2048xf32>
    %2 = arith.mulf %1, %0 : vector<1x2048xf32>
    %cst_1 = arith.constant 4.471500e-02 : f32
    %3 = vector.broadcast %cst_1 : f32 to vector<1x2048xf32>
    %4 = arith.mulf %3, %0 : vector<1x2048xf32>
    %5 = arith.mulf %4, %0 : vector<1x2048xf32>
    %6 = arith.mulf %5, %0 : vector<1x2048xf32>
    %7 = arith.addf %0, %6 : vector<1x2048xf32>
    %cst_2 = arith.constant 0.797884583 : f32
    %8 = vector.broadcast %cst_2 : f32 to vector<1x2048xf32>
    %9 = arith.mulf %8, %7 : vector<1x2048xf32>
    %10 = math.tanh %9 : vector<1x2048xf32>
    %cst_3 = arith.constant 1.000000e+00 : f32
    %11 = vector.broadcast %cst_3 : f32 to vector<1x2048xf32>
    %12 = arith.addf %11, %10 : vector<1x2048xf32>
    %13 = arith.mulf %2, %12 : vector<1x2048xf32>
    %c0_4 = arith.constant 0 : index
    %c0_5 = arith.constant 0 : index
    %14 = vector.load %arg2[%c0_4, %c0_5] : memref<1x2048xf32, #tpu.memory_space<vmem>>, vector<1x2048xf32>
    tpu.vector_store %arg2[%c0_4, %c0_5], %13 {strides = array<i32>} : memref<1x2048xf32, #tpu.memory_space<vmem>>, vector<1x2048xf32>,
    return
  }
  func.func @transform_0(%arg0: i32) -> (i32, i32) {
    %c0_i32 = arith.constant 0 : i32
    %c0_i32_0 = arith.constant 0 : i32
    return %arg0, %c0_i32 : i32, i32
  }
  func.func @transform_1(%arg0: i32) -> (i32, i32) {
    %c0_i32 = arith.constant 0 : i32
    %c0_i32_0 = arith.constant 0 : i32
    return %arg0, %c0_i32 : i32, i32
  }
}

</mosaic_0001>

<bundles_post_ra>
// kernel: tpu_custom_call.1
= control target key start
LH: loop header
LB: loop body
LE: loop exit
PB: predicated region body
PF: predicated region fallthrough
CT: control target
= control target key end

     0   :  { %6 = vsyncpa [#allocation3], 0  ;;  %s138_s0 = inlined_call_operand.hbm [shape: f32[1,2048], index: 0, kind: input, shape index: {}]   ;;  %s139_s1 = inlined_call_operand.hbm [shape: f32[1,2048], index: 1, kind: output, shape index: {}]  }
   0x1   :  { %7 = vsyncpa [#allocation4], 0  ;;  %s13_s8 = sshll.u32 %s138_s0, 4  ;;  %s120_s9 = smov [#allocation2]   ;;  %s14_s8 = int_to_ptr.hbm [resolvable:$true] %s13_s8 }
   0x2   :  { %s15_s10 = sshll.u32 %s120_s9, 4  ;;  %s16_s10 = int_to_ptr.vmem [resolvable:$true] %s15_s10 }
   0x3   :  { %18 = dma.hbm_to_vmem [thread:$0]  %s14_s8, 256, %s16_s10, [#allocation3]  }
   0x4   :  { %116 = dma.done.wait [#allocation3], 256  }
   0x5   :  { %117 = vsyncadd [#allocation3], 4294967040  ;;  %v23_v0 = vld [vmem:[#allocation2] sm:$0xff]  ;;  %v24_v1 = vld [vmem:[#allocation2 + $0x8] sm:$0xff]  ;;  %s121_s0 = smov [#allocation5]   ;;  %s52_s14 = sshll.u32 %s139_s1, 4  ;;  %s53_s14 = int_to_ptr.hbm [resolvable:$true] %s52_s14 }
   0x6   :  { %v27_v2 = vmul.f32 0.044715, %v23_v0  ;;  %v28_v3 = vmul.f32 0.044715, %v24_v1  ;;  %v25_v12 = vmul.f32 0.5, %v23_v0  ;;  %v26_v14 = vmul.f32 0.5, %v24_v1 }
   0x7   :  { %s50_s11 = sshll.u32 %s121_s0, 4  ;;  %s51_s11 = int_to_ptr.vmem [resolvable:$true] %s50_s11 }
   0x8   :  { %v29_v4 = vmul.f32 %v27_v2, %v23_v0  ;;  %v30_v5 = vmul.f32 %v28_v3, %v24_v1 }
   0xa   :  { %v31_v6 = vmul.f32 %v29_v4, %v23_v0  ;;  %v32_v7 = vmul.f32 %v30_v5, %v24_v1 }
   0xc   :  { %v33_v8 = vadd.f32 %v31_v6, %v23_v0  ;;  %v34_v9 = vadd.f32 %v32_v7, %v24_v1 }
   0xe   :  { %v35_v10 = vmul.f32 0.7978846, %v33_v8  ;;  %v36_v11 = vmul.f32 0.7978846, %v34_v9 }
  0x10   :  { %64 = vtanh.f32 %v35_v10 }
  0x11   :  { %66 = vtanh.f32 %v36_v11 }
  0x16   :  { %v65_v13 = vpop.eup %64 }
  0x17   :  { %v67_v15 = vpop.eup %66  ;;  %v39_v16 = vadd.f32 1.0, %v65_v13 }
  0x18   :  { %v40_v17 = vadd.f32 1.0, %v67_v15 }
  0x19   :  { %v41_v18 = vmul.f32 %v39_v16, %v25_v12 }
  0x1a   :  { %v42_v19 = vmul.f32 %v40_v17, %v26_v14 }
  0x1b   :  { %43 = vst [vmem:[#allocation5] sm:$0xff] %v41_v18 }
  0x1c   :  { %44 = vst [vmem:[#allocation5 + $0x8] sm:$0xff] %v42_v19 }
  0x1d   :  { %55 = dma.vmem_to_hbm [thread:$0]  %s51_s11, 256, %s53_s14, [#allocation4]  }
  0x1e   :  { %118 = dma.done.wait [#allocation4], 256  }
  0x1f   :  { %119 = vsyncadd [#allocation4], 4294967040 }
  0x20   :  { %60 = vsyncpa [#allocation3], 1 }
  0x21   :  { %61 = vsyncpa [#allocation4], 1 }

</bundles_post_ra>
